<compile_context>
chip_gen: v7x
topology: tpu7x:2x2x1
jax: 0.10.0
libtpu: 0.0.40
codegen_flags: <defaults>
</compile_context>

<pallas_src>
import functools
import numpy as np
import jax
import jax.numpy as jnp
from jax import lax
from jax.experimental import pallas as pl
from jax.experimental.pallas import tpu as pltpu

EPS = 1e-5
NEG_SLOPE = 0.2


# ----------------------------- Pallas kernel ------------------------------ #
def _resblock_kernel(x_ref, mask_ref, pool_ref, wall_ref, o_ref, *, shifts):
    x = x_ref[0].astype(jnp.float32)            # (Cin, HW)
    cin, hw = x.shape
    cout = o_ref.shape[1]

    # Unpack the consolidated parameter slab: [W1 | W2 | Ws | (b2 + bs)].
    wall = wall_ref[...]
    c1 = 9 * cin
    c2 = c1 + 9 * cout
    c3 = c2 + cin
    w1m = wall[:, :c1]                          # (Cout, 9*Cin)
    w2m = wall[:, c1:c2]                        # (Cout, 9*Cout)
    wsm = wall[:, c2:c3]                        # (Cout, Cin)   1x1 shortcut conv
    b_post = wall[:, c3:c3 + 1]                 # (Cout, 1)     = b2 + bs (post-pool)

    masks = mask_ref[...]                       # (9, HW) 0/1 validity per 3x3 tap
    mask_rows = [masks[k:k + 1, :] for k in range(9)]   # hoisted, reused by both convs

    def inst_norm(a):                           # InstanceNorm2d(affine=False), 1-pass stats
        inv_n = 1.0 / a.shape[1]
        s1 = jnp.sum(a, axis=1, keepdims=True)
        s2 = jnp.sum(a * a, axis=1, keepdims=True)
        mu = s1 * inv_n
        var = s2 * inv_n - mu * mu
        return (a - mu) * lax.rsqrt(var + EPS)

    def lrelu(a):                               # LeakyReLU(0.2)
        return jnp.where(a >= 0, a, NEG_SLOPE * a)

    def conv3x3(a, wmat):
        # im2col via lane rolls (XLU) + boundary masks, then a single MXU matmul:
        #   out[co, p] = sum_{k,ci} wmat[co, k*C+ci] * a[ci, p + shift_k] * mask_k[p]
        rows = []
        for k, s in enumerate(shifts):
            r = a if s == 0 else pltpu.roll(a, shift=(-s) % hw, axis=1)
            rows.append(r * mask_rows[k])
        y = jnp.concatenate(rows, axis=0)       # (9*C, HW)
        return jnp.dot(wmat, y, preferred_element_type=jnp.float32)

    # main branch: norm1 -> act -> conv1 (bias cancelled by norm2) -> norm2 -> act -> conv2
    h = lrelu(inst_norm(x))
    h = conv3x3(h, w1m)
    h = lrelu(inst_norm(h))
    h = conv3x3(h, w2m)

    # learned shortcut: 1x1 conv (its bias is folded into b_post)
    xs = jnp.dot(wsm, x, preferred_element_type=jnp.float32)

    # fused 2x2 average pool (pool is linear -> pool(h) + pool(xs) == pool(h + xs)),
    # pool matrix is zero-padded to a 128-lane output -> unmasked stores.
    pooled = jnp.dot(h + xs, pool_ref[...], preferred_element_type=jnp.float32)
    o_ref[0] = (pooled + b_post).astype(o_ref.dtype)


# ------------------------------ glue helpers ------------------------------ #
def _make_tap_masks(H, W):
    """mask[k, h*W+w] = 1 iff the (dy,dx) neighbor of (h,w) is inside the image."""
    m = np.zeros((9, H * W), np.float32)
    k = 0
    for dy in (-1, 0, 1):
        for dx in (-1, 0, 1):
            for h in range(H):
                for w in range(W):
                    if 0 <= h + dy < H and 0 <= w + dx < W:
                        m[k, h * W + w] = 1.0
            k += 1
    return jnp.asarray(m)


def _make_pool_mat(H, W, n_cols):
    """P[p, q] = 0.25 iff pixel p is in 2x2 cell q (AvgPool2d(2)); extra columns are 0."""
    Wo = W // 2
    P = np.zeros((H * W, n_cols), np.float32)
    for h in range(H):
        for w in range(W):
            P[h * W + w, (h // 2) * Wo + (w // 2)] = 0.25
    return jnp.asarray(P)


def _spectral_normalize(w, n_iter=50):
    # spectral_norm(conv1): divide the weight by its largest singular value.
    # TODO(synk): PyTorch runs one power-iteration per forward from a persistent random u;
    # here the power iteration is run to convergence (deterministic, eval-like).
    wm = w.reshape(w.shape[0], -1)
    u = jnp.ones((wm.shape[0],), jnp.float32)
    u = u / jnp.linalg.norm(u)
    v = jnp.zeros((wm.shape[1],), jnp.float32)
    for _ in range(n_iter):
        v = wm.T @ u
        v = v / (jnp.linalg.norm(v) + 1e-12)
        u = wm @ v
        u = u / (jnp.linalg.norm(u) + 1e-12)
    sigma = u @ (wm @ v)
    return w / sigma


def init_params(key, in_ch, out_ch):
    ks = jax.random.split(key, 6)
    w1 = 0.3 * jax.random.normal(ks[0], (out_ch, in_ch, 3, 3), jnp.float32)
    b1 = 0.1 * jax.random.normal(ks[1], (out_ch,), jnp.float32)
    w2 = 0.3 * jax.random.normal(ks[2], (out_ch, out_ch, 3, 3), jnp.float32)
    b2 = 0.1 * jax.random.normal(ks[3], (out_ch,), jnp.float32)
    ws = 0.3 * jax.random.normal(ks[4], (out_ch, in_ch, 1, 1), jnp.float32)
    bs = 0.1 * jax.random.normal(ks[5], (out_ch,), jnp.float32)
    w1 = _spectral_normalize(w1)
    return dict(w1=w1, b1=b1, w2=w2, b2=b2, ws=ws, bs=bs)


# ------------------------------- wrapper ----------------------------------- #
def resblock_forward(x_nchw, params):
    N, Cin, H, W = x_nchw.shape
    w1, b1, w2, b2, ws, bs = (params[k] for k in ("w1", "b1", "w2", "b2", "ws", "bs"))
    Cout = w1.shape[0]
    HW = H * W
    HW4 = (H // 2) * (W // 2)
    HW4_pad = ((HW4 + 127) // 128) * 128       # lane-dense (unmasked) output stores

    # tap order k = (dy+1)*3 + (dx+1), flattened shift of the neighbor index
    shifts = tuple(dy * W + dx for dy in (-1, 0, 1) for dx in (-1, 0, 1))
    masks = _make_tap_masks(H, W)              # (9, HW)
    pool = _make_pool_mat(H, W, HW4_pad)       # (HW, HW4_pad), zero-padded columns

    # conv weights (Cout, Cin, 3, 3) -> (Cout, 9*Cin) with columns ordered k*Cin + ci
    w1_mat = jnp.transpose(w1.reshape(Cout, Cin, 9), (0, 2, 1)).reshape(Cout, 9 * Cin)
    w2_mat = jnp.transpose(w2.reshape(Cout, Cout, 9), (0, 2, 1)).reshape(Cout, 9 * Cout)
    ws_mat = ws.reshape(Cout, Cin)
    b_post = (b2 + bs).reshape(Cout, 1)        # conv2 + shortcut biases, applied post-pool
    # NOTE: b1 (conv1 bias) is intentionally unused: the InstanceNorm that follows conv1
    # removes any per-channel constant exactly.
    wall = jnp.concatenate([w1_mat, w2_mat, ws_mat, b_post], axis=1)
    wall_cols = wall.shape[1]

    x_flat = x_nchw.reshape(N, Cin, HW)

    kernel = functools.partial(_resblock_kernel, shifts=shifts)
    out_padded = pl.pallas_call(
        kernel,
        out_shape=jax.ShapeDtypeStruct((N, Cout, HW4_pad), jnp.float32),
        grid=(N,),
        in_specs=[
            pl.BlockSpec((1, Cin, HW), lambda n: (n, 0, 0)),
            pl.BlockSpec((9, HW), lambda n: (0, 0)),
            pl.BlockSpec((HW, HW4_pad), lambda n: (0, 0)),
            pl.BlockSpec((Cout, wall_cols), lambda n: (0, 0)),
        ],
        out_specs=pl.BlockSpec((1, Cout, HW4_pad), lambda n: (n, 0, 0)),
        compiler_params=pltpu.CompilerParams(dimension_semantics=("parallel",)),
    )(x_flat, masks, pool, wall)

    return out_padded[:, :, :HW4].reshape(N, Cout, H // 2, W // 2)


# ----------------------------- JAX reference ------------------------------- #
def resblock_reference(x, params):
    w1, b1, w2, b2, ws, bs = (params[k] for k in ("w1", "b1", "w2", "b2", "ws", "bs"))

    def inorm(a):
        mu = a.mean(axis=(2, 3), keepdims=True)
        var = ((a - mu) ** 2).mean(axis=(2, 3), keepdims=True)
        return (a - mu) / jnp.sqrt(var + EPS)

    def lrelu(a):
        return jnp.where(a >= 0, a, NEG_SLOPE * a)

    def conv(a, w, b, pad):
        out = lax.conv_general_dilated(a, w, (1, 1), [(pad, pad), (pad, pad)],
                                       dimension_numbers=("NCHW", "OIHW", "NCHW"))
        return out + b[None, :, None, None]

    def pool(a):
        s = lax.reduce_window(a, 0.0, lax.add, (1, 1, 2, 2), (1, 1, 2, 2), "VALID")
        return s / 4.0

    x_short = pool(conv(x, ws, bs, 0))
    h = conv(lrelu(inorm(x)), w1, b1, 1)
    h = conv(lrelu(inorm(h)), w2, b2, 1)
    return pool(h) + x_short


if __name__ == "__main__":
    key = jax.random.PRNGKey(0)
    k_x, k_p = jax.random.split(key)
    N, Cin, Cout, H, W = 2, 4, 8, 16, 16

    x = jax.random.normal(k_x, (N, Cin, H, W), jnp.float32)
    params = init_params(k_p, Cin, Cout)

    out = resblock_forward(x, params)
    out = jax.block_until_ready(out)

    ref = resblock_reference(x, params)
    assert out.shape == (N, Cout, H // 2, W // 2), out.shape
    if not np.allclose(np.asarray(out), np.asarray(ref), rtol=1e-4, atol=1e-4):
        max_err = float(np.max(np.abs(np.asarray(out) - np.asarray(ref))))
        raise AssertionError(f"mismatch vs reference, max abs err = {max_err}")
    print("KERNEL_OK")
</pallas_src>

<mosaic_0001>
module attributes {stable_mosaic.version = 11 : i64} {
  func.func @_resblock_kernel(%arg0: i32, %arg1: memref<1x4x256xf32, #tpu.memory_space<vmem>>, %arg2: memref<9x256xf32, #tpu.memory_space<vmem>>, %arg3: memref<256x128xf32, #tpu.memory_space<vmem>>, %arg4: memref<8x113xf32, #tpu.memory_space<vmem>>, %arg5: memref<1x8x128xf32, #tpu.memory_space<vmem>>) attributes {dimension_semantics = [#tpu.dimension_semantics<parallel>], iteration_bounds = array<i64: 2>, scalar_prefetch = 0 : i64, scratch_operands = 0 : i64, tpu.core_type = #tpu.core_type<tc>, window_params = [{transform_indices = @transform_0, window_bounds = array<i64: 1, 4, 256>}, {pipeline_mode = #tpu.pipeline_mode<synchronous>, transform_indices = @transform_1, window_bounds = array<i64: 9, 256>}, {pipeline_mode = #tpu.pipeline_mode<synchronous>, transform_indices = @transform_2, window_bounds = array<i64: 256, 128>}, {pipeline_mode = #tpu.pipeline_mode<synchronous>, transform_indices = @transform_3, window_bounds = array<i64: 8, 113>}, {transform_indices = @transform_4, window_bounds = array<i64: 1, 8, 128>}]} {
    %c0 = arith.constant 0 : index
    %c0_0 = arith.constant 0 : index
    %c0_1 = arith.constant 0 : index
    %0 = vector.load %arg1[%c0, %c0_0, %c0_1] : memref<1x4x256xf32, #tpu.memory_space<vmem>>, vector<1x4x256xf32>
    %1 = vector.shape_cast %0 : vector<1x4x256xf32> to vector<4x256xf32>
    %c0_2 = arith.constant 0 : index
    %c0_3 = arith.constant 0 : index
    %2 = vector.load %arg4[%c0_2, %c0_3] : memref<8x113xf32, #tpu.memory_space<vmem>>, vector<8x113xf32>
    %3 = vector.extract_strided_slice %2 {offsets = [0, 0], sizes = [8, 36], strides = [1, 1]} : vector<8x113xf32> to vector<8x36xf32>
    %4 = vector.extract_strided_slice %2 {offsets = [0, 36], sizes = [8, 72], strides = [1, 1]} : vector<8x113xf32> to vector<8x72xf32>
    %5 = vector.extract_strided_slice %2 {offsets = [0, 108], sizes = [8, 4], strides = [1, 1]} : vector<8x113xf32> to vector<8x4xf32>
    %6 = vector.extract_strided_slice %2 {offsets = [0, 112], sizes = [8, 1], strides = [1, 1]} : vector<8x113xf32> to vector<8x1xf32>
    %c0_4 = arith.constant 0 : index
    %c0_5 = arith.constant 0 : index
    %7 = vector.load %arg2[%c0_4, %c0_5] : memref<9x256xf32, #tpu.memory_space<vmem>>, vector<9x256xf32>
    %8 = vector.extract_strided_slice %7 {offsets = [0, 0], sizes = [1, 256], strides = [1, 1]} : vector<9x256xf32> to vector<1x256xf32>
    %9 = vector.extract_strided_slice %7 {offsets = [1, 0], sizes = [1, 256], strides = [1, 1]} : vector<9x256xf32> to vector<1x256xf32>
    %10 = vector.extract_strided_slice %7 {offsets = [2, 0], sizes = [1, 256], strides = [1, 1]} : vector<9x256xf32> to vector<1x256xf32>
    %11 = vector.extract_strided_slice %7 {offsets = [3, 0], sizes = [1, 256], strides = [1, 1]} : vector<9x256xf32> to vector<1x256xf32>
    %12 = vector.extract_strided_slice %7 {offsets = [4, 0], sizes = [1, 256], strides = [1, 1]} : vector<9x256xf32> to vector<1x256xf32>
    %13 = vector.extract_strided_slice %7 {offsets = [5, 0], sizes = [1, 256], strides = [1, 1]} : vector<9x256xf32> to vector<1x256xf32>
    %14 = vector.extract_strided_slice %7 {offsets = [6, 0], sizes = [1, 256], strides = [1, 1]} : vector<9x256xf32> to vector<1x256xf32>
    %15 = vector.extract_strided_slice %7 {offsets = [7, 0], sizes = [1, 256], strides = [1, 1]} : vector<9x256xf32> to vector<1x256xf32>
    %16 = vector.extract_strided_slice %7 {offsets = [8, 0], sizes = [1, 256], strides = [1, 1]} : vector<9x256xf32> to vector<1x256xf32>
    %cst = arith.constant dense<0.000000e+00> : vector<4xf32>
    %17 = vector.multi_reduction <add>, %1, %cst [1] : vector<4x256xf32> to vector<4xf32>
    %18 = vector.shape_cast %17 : vector<4xf32> to vector<4x1xf32>
    %19 = arith.mulf %1, %1 : vector<4x256xf32>
    %cst_6 = arith.constant dense<0.000000e+00> : vector<4xf32>
    %20 = vector.multi_reduction <add>, %19, %cst_6 [1] : vector<4x256xf32> to vector<4xf32>
    %21 = vector.shape_cast %20 : vector<4xf32> to vector<4x1xf32>
    %cst_7 = arith.constant 3.906250e-03 : f32
    %22 = vector.broadcast %cst_7 : f32 to vector<4x1xf32>
    %23 = arith.mulf %18, %22 : vector<4x1xf32>
    %cst_8 = arith.constant 3.906250e-03 : f32
    %24 = vector.broadcast %cst_8 : f32 to vector<4x1xf32>
    %25 = arith.mulf %21, %24 : vector<4x1xf32>
    %26 = arith.mulf %23, %23 : vector<4x1xf32>
    %27 = arith.subf %25, %26 : vector<4x1xf32>
    %28 = vector.broadcast %23 : vector<4x1xf32> to vector<4x256xf32>
    %29 = arith.subf %1, %28 : vector<4x256xf32>
    %cst_9 = arith.constant 9.99999974E-6 : f32
    %30 = vector.broadcast %cst_9 : f32 to vector<4x1xf32>
    %31 = arith.addf %27, %30 : vector<4x1xf32>
    %32 = math.rsqrt %31 : vector<4x1xf32>
    %33 = vector.broadcast %32 : vector<4x1xf32> to vector<4x256xf32>
    %34 = arith.mulf %29, %33 : vector<4x256xf32>
    %cst_10 = arith.constant 0.000000e+00 : f32
    %35 = vector.broadcast %cst_10 : f32 to vector<4x256xf32>
    %36 = arith.cmpf oge, %34, %35 : vector<4x256xf32>
    %cst_11 = arith.constant 2.000000e-01 : f32
    %37 = vector.broadcast %cst_11 : f32 to vector<4x256xf32>
    %38 = arith.mulf %37, %34 : vector<4x256xf32>
    %39 = arith.select %36, %34, %38 : vector<4x256xi1>, vector<4x256xf32>
    %c17_i32 = arith.constant 17 : i32
    %40 = tpu.dynamic_rotate %39 by %c17_i32 dim 1 : vector<4x256xf32>, i32 -> vector<4x256xf32>
    %41 = vector.broadcast %8 : vector<1x256xf32> to vector<4x256xf32>
    %42 = arith.mulf %40, %41 : vector<4x256xf32>
    %c16_i32 = arith.constant 16 : i32
    %43 = tpu.dynamic_rotate %39 by %c16_i32 dim 1 : vector<4x256xf32>, i32 -> vector<4x256xf32>
    %44 = vector.broadcast %9 : vector<1x256xf32> to vector<4x256xf32>
    %45 = arith.mulf %43, %44 : vector<4x256xf32>
    %c15_i32 = arith.constant 15 : i32
    %46 = tpu.dynamic_rotate %39 by %c15_i32 dim 1 : vector<4x256xf32>, i32 -> vector<4x256xf32>
    %47 = vector.broadcast %10 : vector<1x256xf32> to vector<4x256xf32>
    %48 = arith.mulf %46, %47 : vector<4x256xf32>
    %c1_i32 = arith.constant 1 : i32
    %49 = tpu.dynamic_rotate %39 by %c1_i32 dim 1 : vector<4x256xf32>, i32 -> vector<4x256xf32>
    %50 = vector.broadcast %11 : vector<1x256xf32> to vector<4x256xf32>
    %51 = arith.mulf %49, %50 : vector<4x256xf32>
    %52 = vector.broadcast %12 : vector<1x256xf32> to vector<4x256xf32>
    %53 = arith.mulf %39, %52 : vector<4x256xf32>
    %c255_i32 = arith.constant 255 : i32
    %54 = tpu.dynamic_rotate %39 by %c255_i32 dim 1 : vector<4x256xf32>, i32 -> vector<4x256xf32>
    %55 = vector.broadcast %13 : vector<1x256xf32> to vector<4x256xf32>
    %56 = arith.mulf %54, %55 : vector<4x256xf32>
    %c241_i32 = arith.constant 241 : i32
    %57 = tpu.dynamic_rotate %39 by %c241_i32 dim 1 : vector<4x256xf32>, i32 -> vector<4x256xf32>
    %58 = vector.broadcast %14 : vector<1x256xf32> to vector<4x256xf32>
    %59 = arith.mulf %57, %58 : vector<4x256xf32>
    %c240_i32 = arith.constant 240 : i32
    %60 = tpu.dynamic_rotate %39 by %c240_i32 dim 1 : vector<4x256xf32>, i32 -> vector<4x256xf32>
    %61 = vector.broadcast %15 : vector<1x256xf32> to vector<4x256xf32>
    %62 = arith.mulf %60, %61 : vector<4x256xf32>
    %c239_i32 = arith.constant 239 : i32
    %63 = tpu.dynamic_rotate %39 by %c239_i32 dim 1 : vector<4x256xf32>, i32 -> vector<4x256xf32>
    %64 = vector.broadcast %16 : vector<1x256xf32> to vector<4x256xf32>
    %65 = arith.mulf %63, %64 : vector<4x256xf32>
    %66 = tpu.concatenate %42, %45, %48, %51, %53, %56, %59, %62, %65 in 0 : vector<4x256xf32>, vector<4x256xf32>, vector<4x256xf32>, vector<4x256xf32>, vector<4x256xf32>, vector<4x256xf32>, vector<4x256xf32>, vector<4x256xf32>, vector<4x256xf32> -> vector<36x256xf32>
    %cst_12 = arith.constant dense<0.000000e+00> : vector<8x256xf32>
    %67 = tpu.matmul %3, %66, %cst_12 {dimension_numbers = #tpu.dot_dimension_numbers<[1], [0], [0], [1], [0, 0, 1, 1], [], []>} : vector<8x36xf32>, vector<36x256xf32>, vector<8x256xf32> -> vector<8x256xf32>
    %cst_13 = arith.constant dense<0.000000e+00> : vector<8xf32>
    %68 = vector.multi_reduction <add>, %67, %cst_13 [1] : vector<8x256xf32> to vector<8xf32>
    %69 = vector.shape_cast %68 : vector<8xf32> to vector<8x1xf32>
    %70 = arith.mulf %67, %67 : vector<8x256xf32>
    %cst_14 = arith.constant dense<0.000000e+00> : vector<8xf32>
    %71 = vector.multi_reduction <add>, %70, %cst_14 [1] : vector<8x256xf32> to vector<8xf32>
    %72 = vector.shape_cast %71 : vector<8xf32> to vector<8x1xf32>
    %cst_15 = arith.constant 3.906250e-03 : f32
    %73 = vector.broadcast %cst_15 : f32 to vector<8x1xf32>
    %74 = arith.mulf %69, %73 : vector<8x1xf32>
    %cst_16 = arith.constant 3.906250e-03 : f32
    %75 = vector.broadcast %cst_16 : f32 to vector<8x1xf32>
    %76 = arith.mulf %72, %75 : vector<8x1xf32>
    %77 = arith.mulf %74, %74 : vector<8x1xf32>
    %78 = arith.subf %76, %77 : vector<8x1xf32>
    %79 = vector.broadcast %74 : vector<8x1xf32> to vector<8x256xf32>
    %80 = arith.subf %67, %79 : vector<8x256xf32>
    %cst_17 = arith.constant 9.99999974E-6 : f32
    %81 = vector.broadcast %cst_17 : f32 to vector<8x1xf32>
    %82 = arith.addf %78, %81 : vector<8x1xf32>
    %83 = math.rsqrt %82 : vector<8x1xf32>
    %84 = vector.broadcast %83 : vector<8x1xf32> to vector<8x256xf32>
    %85 = arith.mulf %80, %84 : vector<8x256xf32>
    %cst_18 = arith.constant 0.000000e+00 : f32
    %86 = vector.broadcast %cst_18 : f32 to vector<8x256xf32>
    %87 = arith.cmpf oge, %85, %86 : vector<8x256xf32>
    %cst_19 = arith.constant 2.000000e-01 : f32
    %88 = vector.broadcast %cst_19 : f32 to vector<8x256xf32>
    %89 = arith.mulf %88, %85 : vector<8x256xf32>
    %90 = arith.select %87, %85, %89 : vector<8x256xi1>, vector<8x256xf32>
    %c17_i32_20 = arith.constant 17 : i32
    %91 = tpu.dynamic_rotate %90 by %c17_i32_20 dim 1 : vector<8x256xf32>, i32 -> vector<8x256xf32>
    %92 = vector.broadcast %8 : vector<1x256xf32> to vector<8x256xf32>
    %93 = arith.mulf %91, %92 : vector<8x256xf32>
    %c16_i32_21 = arith.constant 16 : i32
    %94 = tpu.dynamic_rotate %90 by %c16_i32_21 dim 1 : vector<8x256xf32>, i32 -> vector<8x256xf32>
    %95 = vector.broadcast %9 : vector<1x256xf32> to vector<8x256xf32>
    %96 = arith.mulf %94, %95 : vector<8x256xf32>
    %c15_i32_22 = arith.constant 15 : i32
    %97 = tpu.dynamic_rotate %90 by %c15_i32_22 dim 1 : vector<8x256xf32>, i32 -> vector<8x256xf32>
    %98 = vector.broadcast %10 : vector<1x256xf32> to vector<8x256xf32>
    %99 = arith.mulf %97, %98 : vector<8x256xf32>
    %c1_i32_23 = arith.constant 1 : i32
    %100 = tpu.dynamic_rotate %90 by %c1_i32_23 dim 1 : vector<8x256xf32>, i32 -> vector<8x256xf32>
    %101 = vector.broadcast %11 : vector<1x256xf32> to vector<8x256xf32>
    %102 = arith.mulf %100, %101 : vector<8x256xf32>
    %103 = vector.broadcast %12 : vector<1x256xf32> to vector<8x256xf32>
    %104 = arith.mulf %90, %103 : vector<8x256xf32>
    %c255_i32_24 = arith.constant 255 : i32
    %105 = tpu.dynamic_rotate %90 by %c255_i32_24 dim 1 : vector<8x256xf32>, i32 -> vector<8x256xf32>
    %106 = vector.broadcast %13 : vector<1x256xf32> to vector<8x256xf32>
    %107 = arith.mulf %105, %106 : vector<8x256xf32>
    %c241_i32_25 = arith.constant 241 : i32
    %108 = tpu.dynamic_rotate %90 by %c241_i32_25 dim 1 : vector<8x256xf32>, i32 -> vector<8x256xf32>
    %109 = vector.broadcast %14 : vector<1x256xf32> to vector<8x256xf32>
    %110 = arith.mulf %108, %109 : vector<8x256xf32>
    %c240_i32_26 = arith.constant 240 : i32
    %111 = tpu.dynamic_rotate %90 by %c240_i32_26 dim 1 : vector<8x256xf32>, i32 -> vector<8x256xf32>
    %112 = vector.broadcast %15 : vector<1x256xf32> to vector<8x256xf32>
    %113 = arith.mulf %111, %112 : vector<8x256xf32>
    %c239_i32_27 = arith.constant 239 : i32
    %114 = tpu.dynamic_rotate %90 by %c239_i32_27 dim 1 : vector<8x256xf32>, i32 -> vector<8x256xf32>
    %115 = vector.broadcast %16 : vector<1x256xf32> to vector<8x256xf32>
    %116 = arith.mulf %114, %115 : vector<8x256xf32>
    %117 = tpu.concatenate %93, %96, %99, %102, %104, %107, %110, %113, %116 in 0 : vector<8x256xf32>, vector<8x256xf32>, vector<8x256xf32>, vector<8x256xf32>, vector<8x256xf32>, vector<8x256xf32>, vector<8x256xf32>, vector<8x256xf32>, vector<8x256xf32> -> vector<72x256xf32>
    %cst_28 = arith.constant dense<0.000000e+00> : vector<8x256xf32>
    %118 = tpu.matmul %4, %117, %cst_28 {dimension_numbers = #tpu.dot_dimension_numbers<[1], [0], [0], [1], [0, 0, 1, 1], [], []>} : vector<8x72xf32>, vector<72x256xf32>, vector<8x256xf32> -> vector<8x256xf32>
    %cst_29 = arith.constant dense<0.000000e+00> : vector<8x256xf32>
    %119 = tpu.matmul %5, %1, %cst_29 {dimension_numbers = #tpu.dot_dimension_numbers<[1], [0], [0], [1], [0, 0, 1, 1], [], []>} : vector<8x4xf32>, vector<4x256xf32>, vector<8x256xf32> -> vector<8x256xf32>
    %120 = arith.addf %118, %119 : vector<8x256xf32>
    %c0_30 = arith.constant 0 : index
    %c0_31 = arith.constant 0 : index
    %121 = vector.load %arg3[%c0_30, %c0_31] : memref<256x128xf32, #tpu.memory_space<vmem>>, vector<256x128xf32>
    %cst_32 = arith.constant dense<0.000000e+00> : vector<8x128xf32>
    %122 = tpu.matmul %120, %121, %cst_32 {dimension_numbers = #tpu.dot_dimension_numbers<[1], [0], [0], [1], [0, 0, 1, 1], [], []>} : vector<8x256xf32>, vector<256x128xf32>, vector<8x128xf32> -> vector<8x128xf32>
    %123 = vector.broadcast %6 : vector<8x1xf32> to vector<8x128xf32>
    %124 = arith.addf %122, %123 : vector<8x128xf32>
    %c0_33 = arith.constant 0 : index
    %c0_34 = arith.constant 0 : index
    %c0_35 = arith.constant 0 : index
    %125 = vector.load %arg5[%c0_33, %c0_34, %c0_35] : memref<1x8x128xf32, #tpu.memory_space<vmem>>, vector<1x8x128xf32>
    %126 = vector.shape_cast %125 : vector<1x8x128xf32> to vector<8x128xf32>
    %127 = vector.shape_cast %124 : vector<8x128xf32> to vector<1x8x128xf32>
    tpu.vector_store %arg5[%c0_33, %c0_34, %c0_35], %127 {strides = array<i32>} : memref<1x8x128xf32, #tpu.memory_space<vmem>>, vector<1x8x128xf32>,
    return
  }
  func.func @transform_0(%arg0: i32) -> (i32, i32, i32) {
    %c0_i32 = arith.constant 0 : i32
    %c0_i32_0 = arith.constant 0 : i32
    %c0_i32_1 = arith.constant 0 : i32
    return %arg0, %c0_i32, %c0_i32_0 : i32, i32, i32
  }
  func.func @transform_1(%arg0: i32) -> (i32, i32) {
    %c0_i32 = arith.constant 0 : i32
    %c0_i32_0 = arith.constant 0 : i32
    %c0_i32_1 = arith.constant 0 : i32
    return %c0_i32, %c0_i32_0 : i32, i32
  }
  func.func @transform_2(%arg0: i32) -> (i32, i32) {
    %c0_i32 = arith.constant 0 : i32
    %c0_i32_0 = arith.constant 0 : i32
    %c0_i32_1 = arith.constant 0 : i32
    return %c0_i32, %c0_i32_0 : i32, i32
  }
  func.func @transform_3(%arg0: i32) -> (i32, i32) {
    %c0_i32 = arith.constant 0 : i32
    %c0_i32_0 = arith.constant 0 : i32
    %c0_i32_1 = arith.constant 0 : i32
    return %c0_i32, %c0_i32_0 : i32, i32
  }
  func.func @transform_4(%arg0: i32) -> (i32, i32, i32) {
    %c0_i32 = arith.constant 0 : i32
    %c0_i32_0 = arith.constant 0 : i32
    %c0_i32_1 = arith.constant 0 : i32
    return %arg0, %c0_i32, %c0_i32_0 : i32, i32, i32
  }
}

</mosaic_0001>

<bundles_post_ra>
// kernel: tpu_custom_call.1
= control target key start
LH: loop header
LB: loop body
LE: loop exit
PB: predicated region body
PF: predicated region fallthrough
CT: control target
= control target key end

     0   :  { %9 = vsyncpa [#allocation3], 0  ;;  %s1931_s0 = inlined_call_operand.hbm [shape: f32[2,4,256], index: 0, kind: input, shape index: {}]   ;;  %s1932_s1 = inlined_call_operand.hbm [shape: f32[9,256], index: 1, kind: input, shape index: {}]   ;;  %s1933_s2 = inlined_call_operand.hbm [shape: f32[256,128], index: 2, kind: input, shape index: {}]   ;;  %s1934_s3 = inlined_call_operand.vmem [shape: f32[8,113], index: 3, kind: input, shape index: {}]   ;;  %s1935_s4 = inlined_call_operand.hbm [shape: f32[2,8,128], index: 4, kind: output, shape index: {}]  }
   0x1   :  { %11 = vsyncpa [#allocation3 + $0x1], 0 }
   0x2   :  { %12 = vsyncpa [#allocation6], 0 }
   0x3   :  { %13 = vsyncpa [#allocation4], 0 }
   0x4   :  { %15 = vsyncpa [#allocation4 + $0x1], 0  ;;  %s1437_s15 = smov 0   ;;  %s1439_s16 = smov 0  }
   0x5   :  { %s1441_s17 = smov 0   ;;  %s1443_s18 = smov 0  }
   0x6 LB: > { %s1458_s19 = sadd.s32 4294967295, %s1389_s18   ;;  %s1022_s20 = sadd.s32 4294967294, %s1389_s18   ;;  %s1389_s18 = sphi %s1443_s18, %s1955_s18   ;;  %s1385_s17 = sphi %s1441_s17, %s1954_s17   ;;  %s1381_s16 = sphi %s1439_s16, %s1953_s16   ;;  %s1377_s15 = sphi %s1437_s15, %s1952_s15  }
   0x7   : > { %p41_p0 = scmp.ne.s32.totalorder %s1381_s16, %s1377_s15  ;;  %p1936_p1 = scmp.eq.s32.totalorder %s1458_s19, 0 }
   0x8   : > { %p134_p3 = scmp.eq.s32.totalorder %s1022_s20, 1  ;;  %p1023_p5 = scmp.ge.s32.totalorder %s1389_s18, 1 }
   0x9   : > { %p1467_p4 = por %p1936_p1, %p41_p0  ;;  %p141_p7 = scmp.lt.s32.totalorder %s1389_s18, 3 }
   0xa   : > { %p1472_p6 = por %p134_p3, %p41_p0  ;;  %s1391_s24 = smov [#allocation5]  }
   0xb   : > { %s1939_s21 = scalar_select %p1467_p4, 1, 0 }
   0xc   : > { %s1940_s22 = scalar_select %p1472_p6, 1, 0 }
   0xd   : > { %p1477_p8 = pnand %p1023_p5, %p141_p7  ;;  %s153_s25 = sshll.u32 %s1391_s24, 4  ;;  %s1481_s25 = int_to_ptr.vmem [resolvable:$true] %s153_s25 }
   0xe   : > { %s1392_s27 = smov [#allocation7]   ;;  %s1233_s5 = scalar_lea.hbm %s1932_s1, 512 }
   0xf   : > { %p1154_p9 = pneg %p1477_p8  ;;  %s166_s28 = sshll.u32 %s1392_s27, 4  ;;  %s1492_s28 = int_to_ptr.vmem [resolvable:$true] %s166_s28 }
  0x10   : > { %p1234_p12 = scmp.ne.s32.totalorder %s1932_s1, %s1233_s5  ;;  %p1240_p5 = scmp.lt.u32.totalorder %s1233_s5, %s1932_s1 }
  0x11   : > { %p1488_p11 = pnand %p1154_p9, %p1936_p1 }
  0x13   : > { %p1235_p13 = pneg %p1488_p11 }
  0x15   : > { %p1236_p0 = pnand %p1235_p13, %p1234_p12 }
  0x17   : > { %p1237_p3 = pneg %p1236_p0 }
  0x19   : > { %p1242_p7 = pnand %p1240_p5, %p1237_p3 }
  0x1b   : > { %1245 = shalt.err (!%p1242_p7)
}
  0x1c   : > { %s1246_s10 = scalar_lea.vmem %s1481_s25, 512  ;;  %p1254_p2 = scmp.lt.s32.totalorder %s1481_s25, %s1481_s25 }
  0x1d   : > { %p1247_p9 = scmp.ne.s32.totalorder %s1481_s25, %s1246_s10  ;;  %p1255_p12 = scmp.lt.s32.totalorder %s1246_s10, %s1246_s10 }
  0x1f   : > { %p1249_p10 = pnand %p1247_p9, %p1235_p13  ;;  %p1256_p0 = por %p1255_p12, %p1254_p2 }
  0x21   : > { %p1250_p1 = pneg %p1249_p10 }
  0x23   : > { %p1257_p6 = pnand %p1256_p0, %p1250_p1 }
  0x25   : > { %1260 = shalt.err (!%p1257_p6)
}
  0x26   : > { %s1393_s11 = smov 256   ;;  %s1394_s12 = smov 16  }
  0x27   : > { %1157 = dma.hbm_to_vmem [thread:$0]  (!%p1488_p11), %s1932_s1, 512, %s1481_s25, [#allocation6], %s1393_s11, %s1393_s11, %s1394_s12  }
  0x28   : > { %s1261_s27 = scalar_lea.hbm %s1933_s2, 4096 }
  0x29   : > { %p1262_p2 = scmp.ne.s32.totalorder %s1933_s2, %s1261_s27  ;;  %p1268_p10 = scmp.lt.u32.totalorder %s1261_s27, %s1933_s2 }
  0x2b   : > { %p1264_p1 = pnand %p1262_p2, %p1235_p13 }
  0x2d   : > { %p1265_p6 = pneg %p1264_p1 }
  0x2f   : > { %p1270_p3 = pnand %p1268_p10, %p1265_p6 }
  0x31   : > { %1273 = shalt.err (!%p1270_p3)
}
  0x32   : > { %s1274_s25 = scalar_lea.vmem %s1492_s28, 4096  ;;  %p1282_p12 = scmp.lt.s32.totalorder %s1492_s28, %s1492_s28 }
  0x33   : > { %p1275_p5 = scmp.ne.s32.totalorder %s1492_s28, %s1274_s25  ;;  %p1283_p0 = scmp.lt.s32.totalorder %s1274_s25, %s1274_s25 }
  0x35   : > { %p1277_p7 = pnand %p1275_p5, %p1235_p13  ;;  %p1284_p2 = por %p1283_p0, %p1282_p12 }
  0x37   : > { %p1278_p9 = pneg %p1277_p7 }
  0x39   : > { %p1285_p1 = pnand %p1284_p2, %p1278_p9 }
  0x3b   : > { %1288 = shalt.err (!%p1285_p1)
}
  0x3c   : > { %s1395_s7 = smov 128   ;;  %s1396_s8 = smov 8  }
  0x3d   : > { %1160 = dma.hbm_to_vmem [thread:$0]  (!%p1488_p11), %s1933_s2, 4096, %s1492_s28, [#allocation6], %s1395_s7, %s1395_s7, %s1396_s8  }
  0x3e   : > { %s1547_s11 = sadd.s32 1, %s1389_s18   ;;  %s28_s13 = sadd.s32 1, %s1385_s17 }
  0x3f   : > { %s25_s12 = ssub.s32 %s1389_s18, %s1547_s11  ;;  %p35_p6 = scmp.ne.s32.totalorder %s1385_s17, %s1381_s16 }
  0x40   : > { %p26_p13 = scmp.eq.s32.totalorder %s25_s12, 0  ;;  %p36_p10 = scmp.eq.s32.totalorder %s1389_s18, 0 }
  0x41   : > { %p1943_p5 = scmp.eq.s32.totalorder %s1458_s19, 1  ;;  %p1171_p9 = scmp.lt.s32.totalorder %s1389_s18, 2 }
  0x42   : > { %s1556_s14 = scalar_select %p26_p13, %s1385_s17, %s28_s13  }
  0x43   : > { %p37_p3 = por %p36_p10, %p35_p6  ;;  %p1560_p7 = por %p1943_p5, %p35_p6 }
  0x44   : > { %s183_s26 = sand.u32 1, %s1385_s17   ;;  %s1048_s28 = sshll.u32 %s1389_s18, 7 }
  0x45   : > { %s1944_s20 = scalar_select %p1560_p7, 1, 0 }
  0x46   : > { %s1027_s24 = sshll.u32 %s183_s26, 3  ;;  %s1570_s30 = scalar_lea.hbm %s1931_s0, %s1048_s28 }
  0x47   : > { %s187_s5 = scalar_lea.vmem [#allocation2], %s1027_s24  ;;  %p1574_p11 = pnand %p1171_p9, %p37_p3 }
  0x48   : > { %s195_s6 = sshll.u32 %s187_s5, 4  ;;  %s184_s7 = scalar_lea.sflag [#allocation3], %s183_s26  ;;  %s1572_s6 = int_to_ptr.vmem [resolvable:$true] %s195_s6 }
  0x49   : > { %s1289_s8 = scalar_lea.hbm %s1570_s30, 128  ;;  %p1291_p0 = pneg %p1574_p11 }
  0x4a   : > { %p1290_p12 = scmp.ne.s32.totalorder %s1570_s30, %s1289_s8  ;;  %s1294_s12 = scalar_lea.hbm %s1931_s0, 256 }
  0x4b   : > { %p1295_p13 = scmp.lt.u32.totalorder %s1570_s30, %s1931_s0  ;;  %p1296_p6 = scmp.lt.u32.totalorder %s1294_s12, %s1289_s8 }
  0x4c   : > { %p1292_p2 = pnand %p1291_p0, %p1290_p12  ;;  %p1298_p3 = scmp.lt.u32.totalorder %s1289_s8, %s1570_s30 }
  0x4d   : > { %p1297_p10 = por %p1296_p6, %p1295_p13 }
  0x4e   : > { %p1293_p1 = pneg %p1292_p2 }
  0x4f   : > { %p1299_p5 = por %p1298_p3, %p1297_p10 }
  0x51   : > { %p1300_p9 = pnand %p1299_p5, %p1293_p1 }
  0x53   : > { %1303 = shalt.err (!%p1300_p9)
}
  0x54   : > { %s1304_s26 = scalar_lea.vmem %s1572_s6, 128  ;;  %s1397_s28 = smov [#allocation2]  }
  0x55   : > { %p1305_p12 = scmp.ne.s32.totalorder %s1572_s6, %s1304_s26  ;;  %s1309_s27 = sshll.u32 %s1397_s28, 4  ;;  %s1310_s27 = int_to_ptr.vmem [resolvable:$false] %s1309_s27 }
  0x56   : > { %s1311_s29 = scalar_lea.vmem %s1310_s27, 256  ;;  %p1312_p4 = scmp.lt.s32.totalorder %s1572_s6, %s1310_s27 }
  0x57   : > { %p1307_p2 = pnand %p1305_p12, %p1291_p0  ;;  %p1313_p13 = scmp.lt.s32.totalorder %s1311_s29, %s1304_s26 }
  0x59   : > { %p1308_p7 = pneg %p1307_p2  ;;  %p1314_p6 = por %p1313_p13, %p1312_p4 }
  0x5b   : > { %p1315_p10 = pnand %p1314_p6, %p1308_p7 }
  0x5d   : > { %1318 = shalt.err (!%p1315_p10)
}
  0x5e   : > { %1164 = dma.hbm_to_vmem [thread:$0]  (!%p1574_p11), %s1570_s30, 128, %s1572_s6, %s184_s7  }
  0x5f   : > { %204 = sbr.rel (%p1477_p8) target bundleno = 1421 (0x58d), region = 36  ;;  %s1606_s5 = sand.u32 (!%p1477_p8), 1, %s1381_s16  }
  0x60   : > { %s1031_s8 = sshll.u32 (!%p1477_p8), %s1606_s5, 3  ;;  %s207_s9 = scalar_lea.sflag (!%p1477_p8), [#allocation3], %s1606_s5 }
  0x61   : > { %s210_s10 = scalar_lea.vmem (!%p1477_p8), [#allocation2], %s1031_s8  ;;  %p1946_p4 = scmp.ne.s32.totalorder (!%p1477_p8), %s1939_s21, 0 }
  0x66   : > { %1364 = dma.done.wait (%p1946_p4), %s207_s9, 128  }
  0x67   : > { %1366 = vsyncadd (%p1946_p4), %s207_s9, 4294967168  ;;  %p1947_p7 = scmp.eq.s32.totalorder %s1458_s19, 0 }
  0x69   : > { %1368 = dma.done.wait (%p1947_p7), [#allocation6], 4608   ;;  %p1948_p8 = pmov %p1947_p7 }
  0x6a   : > { %vm252_vm0 = vcmask 1043456   ;;  %v1620_v0 = vld [vmem:[%s210_s10] sm:$0xff]  ;;  %v1398_v15 = vmov 839922192   ;;  %v275_v17 = vlaneseq  ;;  %s1399_s21 = smov 1   ;;  %s1400_s23 = smov 16  }
  0x6b   : > { %1370 = vsyncadd (%p1948_p8), [#allocation6], 4294962688  ;;  %v1624_v1 = vcombine.high %v1620_v0, %v1620_v0  ;;  %v253_v2 = vsel %vm252_vm0, %v1620_v0, 0.0  ;;  %v258_v3 = vmul.f32 %v1620_v0, %v1620_v0  ;;  %v273_v16 = vunpack.c.l.s4 %v1398_v15  ;;  %s1401_s30 = smov 17   ;;  %s1402_s6 = smov 127   ;;  %v245_v36 = vld [vmem:[#allocation5] sm:$0xff] }
  0x6c   : > { %v1634_v21 = vshrl.u32 %v275_v17, 7  ;;  %s1403_s25 = smov 15   ;;  %s1404_s7 = smov 112   ;;  %v1407_v31 = vmov 0.0   ;;  %v246_v37 = vld [vmem:[#allocation5 + $0x8] sm:$0xff]  ;;  %v1662_v43 = vand.u32 127, %v275_v17 }
  0x6d   : > { %v254_v4 = vsel %vm252_vm0, %v1624_v1, 0.0  ;;  %v260_v5 = vcombine.high %v258_v3, %v258_v3  ;;  %v262_v6 = vsel %vm252_vm0, %v258_v3, 0.0  ;;  %v274_v20 = vunpack.c.0.s8 %v273_v16  ;;  %s1405_s12 = smov 113   ;;  %s1406_s13 = smov 111   ;;  %559 = vmatprep.mubr.f32.mxu1 %v1407_v31 }
  0x6e   : > { %v255_v7 = vadd.f32 %v254_v4, %v253_v2  ;;  %v371_v35 = vsub.s32 4, %v1634_v21  ;;  %v391_v44 = vsub.s32 5, %v1634_v21  ;;  %v425_v46 = vsub.s32 7, %v1634_v21  ;;  %s1408_s28 = smov 20   ;;  %s1409_s27 = smov 92  }
  0x6f   : > { %v263_v8 = vsel %vm252_vm0, %v260_v5, 0.0  ;;  %v277_v22 = vsub.s32 %v274_v20, %v1634_v21  ;;  %v327_v47 = vsub.s32 1, %v1634_v21  ;;  %v361_v50 = vsub.s32 3, %v1634_v21  ;;  %s1045_s29 = sshll.u32 %s1458_s19, 7  ;;  %s242_s9 = scalar_lea.vmem [#allocation8], %s1031_s8 }
  0x70   : > { %256 = vadd.xlane.f32.xlu0 %v255_v7  ;;  %v264_v9 = vadd.f32 %v263_v8, %v262_v6  ;;  %v1658_v39 = vrot.slane %v245_v36, %v371_v35  ;;  %v1660_v40 = vrot.slane %v246_v37, %v371_v35  ;;  %v310_v51 = vsub.s32 0, %v1634_v21  ;;  %s933_s10 = sshll.u32 %s242_s9, 4  ;;  %p1949_p0 = scmp.ne.s32.totalorder %s1944_s20, 0  ;;  %s1889_s10 = int_to_ptr.vmem [resolvable:$true] %s933_s10 }
  0x71   : > { %vm386_vm2 = vcmp.lt.s32.totalorder %v1662_v43, 127  ;;  %v1672_v52 = vrot.slane %v245_v36, %v391_v44  ;;  %v1674_v53 = vrot.slane %v246_v37, %v391_v44  ;;  %vm420_vm3 = vcmp.lt.s32.totalorder %v1662_v43, 112  ;;  %s1411_s19 = smov [#allocation8]  }
  0x72   : > { %v379_v45 = vcombine.low %v1658_v39, %v1660_v40  ;;  %v1679_v55 = vrot.slane %v245_v36, %v425_v46  ;;  %vm322_vm4 = vcmp.lt.s32.totalorder %v1662_v43, 16  ;;  %v344_v56 = vsub.s32 2, %v1634_v21  ;;  %s1323_s8 = sshll.u32 %s1411_s19, 4  ;;  %s1324_s8 = int_to_ptr.vmem [resolvable:$false] %s1323_s8 }
  0x73   : > { %v1683_v57 = vrot.slane %v246_v37, %v425_v46  ;;  %v1685_v58 = vrot.slane %v245_v36, %v327_v47  ;;  %v1687_v59 = vrot.slane %v246_v37, %v327_v47  ;;  %vm356_vm5 = vcmp.lt.s32.totalorder %v1662_v43, 1  ;;  %p1326_p5 = scmp.lt.s32.totalorder %s1889_s10, %s1324_s8 }
  0x74   : > { %265 = vadd.xlane.f32.xlu0 %v264_v9  ;;  %v1690_v61 = vrot.slane %v245_v36, %v361_v50  ;;  %v1692_v62 = vrot.slane %v246_v37, %v361_v50  ;;  %vm305_vm6 = vcmp.lt.s32.totalorder %v1662_v43, 17  ;;  %v1695_v63 = vrot.slane %v245_v36, %v310_v51 }
  0x75   : > { %v1701_v4 = vrot.slane %v246_v37, %v310_v51  ;;  %vm339_vm7 = vcmp.lt.s32.totalorder %v1662_v43, 15  ;;  %v1708_v8 = vrot.slane %v245_v36, %v344_v56  ;;  %v408_v9 = vsub.s32 6, %v1634_v21 }
  0x76   : > { %v1727_v21 = vrot.slane %v246_v37, %v344_v56  ;;  %vm403_vm8 = vcmp.lt.s32.totalorder %v1662_v43, 113  ;;  %vm437_vm9 = vcmp.lt.s32.totalorder %v1662_v43, 111  ;;  %vm485_vm10 = vcmask 293888  }
  0x77   : > { %vm658_vm11 = vcmask 31744   ;;  %vm738_vm14 = vcmask 588800  }
  0xfd   : > { %v257_v10 = vpop.xlane.xlu0 %256 }
  0xfe   : > { %v267_v11 = vmul.f32 0.00390625, %v257_v10 }
 0x100   : > { %v269_v13 = vmul.f32 %v267_v11, %v267_v11  ;;  %v278_v23 = vrot.slane %v267_v11, %v277_v22 }
 0x101   : > { %v266_v12 = vpop.xlane.xlu0 %265 }
 0x102   : > { %v268_v14 = vmul.f32 0.00390625, %v266_v12  ;;  %v280_v25 = vsub.f32 %v1620_v0, %v278_v23 }
 0x104   : > { %v270_v18 = vsub.f32 %v268_v14, %v269_v13 }
 0x106   : > { %v281_v19 = vadd.f32 1e-05, %v270_v18 }
 0x108   : > { %1229 = vrsqrt.f32 %v281_v19 }
 0x112   : > { %v1230_v24 = vpop.eup %1229 }
 0x113   : > { %v290_v26 = vrot.slane %v1230_v24, %v277_v22  ;;  %v1732_v24 = vrot.slane %v245_v36, %v408_v9 }
 0x115   : > { %v292_v27 = vmul.f32 %v290_v26, %v280_v25  ;;  %v1734_v25 = vrot.slane %v246_v37, %v408_v9 }
 0x117   : > { %vm293_vm1 = vcmp.ge.f32.partialorder %v292_v27, 0.0  ;;  %v294_v28 = vmul.f32 0.2, %v292_v27 }
 0x119   : > { %v295_v29 = vsel %vm293_vm1, %v292_v27, %v294_v28 }
 0x11a   : > { %352 = vrot.lane.b32.xlu0 %v295_v29, %s1399_s21  ;;  %318 = vrot.lane.b32.xlu1 %v295_v29, %s1400_s23  ;;  %v297_v30 = vcombine.high %v295_v29, %v295_v29  ;;  %v1676_v54 = vmul.f32 %v379_v45, %v295_v29 }
 0x11c   : > { %v463_v47 = vcombine.high %v1676_v54, %v1676_v54 }
 0x11e   : > { %299 = vrot.lane.b32.xlu1 %v295_v29, %s1401_s30  ;;  %384 = vrot.lane.b32.xlu0 %v297_v30, %s1402_s6 }
 0x122   : > { %335 = vrot.lane.b32.xlu1 %v295_v29, %s1403_s25  ;;  %418 = vrot.lane.b32.xlu0 %v297_v30, %s1404_s7 }
 0x126   : > { %382 = vrot.lane.b32.xlu1 %v295_v29, %s1402_s6  ;;  %401 = vrot.lane.b32.xlu0 %v297_v30, %s1405_s12 }
 0x12a   : > { %416 = vrot.lane.b32.xlu1 %v295_v29, %s1404_s7  ;;  %435 = vrot.lane.b32.xlu0 %v297_v30, %s1406_s13 }
 0x12e   : > { %320 = vrot.lane.b32.xlu1 %v297_v30, %s1400_s23 }
 0x132   : > { %354 = vrot.lane.b32.xlu1 %v297_v30, %s1399_s21 }
 0x136   : > { %301 = vrot.lane.b32.xlu1 %v297_v30, %s1401_s30 }
 0x13a   : > { %337 = vrot.lane.b32.xlu1 %v297_v30, %s1403_s25 }
 0x13e   : > { %399 = vrot.lane.b32.xlu1 %v295_v29, %s1405_s12 }
 0x142   : > { %433 = vrot.lane.b32.xlu1 %v295_v29, %s1406_s13 }
 0x18c   : > { %v319_v32 = vpop.permute.xlu1 %318  ;;  %v353_v41 = vpop.permute.xlu0 %352 }
 0x190   : > { %v300_v33 = vpop.permute.xlu1 %299  ;;  %v385_v49 = vpop.permute.xlu0 %384 }
 0x194   : > { %v1655_v34 = vpop.permute.xlu1 %335  ;;  %v419_v5 = vpop.permute.xlu0 %418 }
 0x198   : > { %v383_v38 = vpop.permute.xlu1 %382  ;;  %v402_v37 = vpop.permute.xlu0 %401 }
 0x199   : > { %v387_v10 = vsel %vm386_vm2, %v383_v38, %v385_v49  ;;  %v388_v11 = vsel %vm386_vm2, %v385_v49, %v383_v38 }
 0x19a   : > { %v397_v22 = vmul.f32 %v1672_v52, %v387_v10  ;;  %v398_v23 = vmul.f32 %v1674_v53, %v388_v11  ;;  %v1761_v10 = vld [vmem:[#allocation5 + $0x18] ss:$0 sm:$0xff] }
 0x19c   : > { %v417_v42 = vpop.permute.xlu1 %416  ;;  %v467_v45 = vrot.slane %v397_v22, 4  ;;  %v468_v46 = vrot.slane %v398_v23, 4  ;;  %v436_v11 = vpop.permute.xlu0 %435  ;;  %v1771_v22 = vld [vmem:[#allocation5 + $0x10] ss:$0 sm:$0xff] }
 0x19d   : > { %v421_v12 = vsel %vm420_vm3, %v417_v42, %v419_v5  ;;  %v422_v13 = vsel %vm420_vm3, %v419_v5, %v417_v42 }
 0x19e   : > { %v431_v26 = vmul.f32 %v1679_v55, %v421_v12  ;;  %v432_v27 = vmul.f32 %v1683_v57, %v422_v13  ;;  %v482_v13 = vsel %vm252_vm0, %v463_v47, %v468_v46 }
 0x1a0   : > { %v321_v48 = vpop.permute.xlu1 %320  ;;  %v473_v5 = vrot.slane %v431_v26, 4  ;;  %v1780_v26 = vld [vmem:[%s1934_s3] sm:$0xff] }
 0x1a1   : > { %v323_v2 = vsel %vm322_vm4, %v319_v32, %v321_v48  ;;  %v324_v3 = vsel %vm322_vm4, %v321_v48, %v319_v32 }
 0x1a2   : > { %v333_v15 = vmul.f32 %v1685_v58, %v324_v3  ;;  %v334_v16 = vmul.f32 %v1687_v59, %v323_v2 }
 0x1a4   : > { %v355_v60 = vpop.permute.xlu1 %354  ;;  %v452_v32 = vrot.slane %v333_v15, 4  ;;  %v481_v15 = vsel %vm252_vm0, %v1676_v54, %v467_v45 }
 0x1a5   : > { %v357_v6 = vsel %vm356_vm5, %v353_v41, %v355_v60  ;;  %v358_v7 = vsel %vm356_vm5, %v355_v60, %v353_v41 }
 0x1a6   : > { %v367_v19 = vmul.f32 %v1690_v61, %v358_v7  ;;  %v368_v20 = vmul.f32 %v1692_v62, %v357_v6  ;;  %v474_v6 = vrot.slane %v432_v27, 4 }
 0x1a8   : > { %v302_v14 = vpop.permute.xlu1 %301  ;;  %v458_v38 = vrot.slane %v367_v19, 4  ;;  %v459_v41 = vrot.slane %v368_v20, 4 }
 0x1a9   : > { %v306_v17 = vsel %vm305_vm6, %v300_v33, %v302_v14  ;;  %v307_v18 = vsel %vm305_vm6, %v302_v14, %v300_v33  ;;  %v453_v33 = vrot.slane %v334_v16, 4 }
 0x1aa   : > { %v316_v28 = vmul.f32 %v1695_v63, %v307_v18  ;;  %v317_v29 = vmul.f32 %v1701_v4, %v306_v17 }
 0x1ac   : > { %v338_v30 = vpop.permute.xlu1 %337  ;;  %v478_v49 = vsel %vm252_vm0, %v317_v29, %v453_v33 }
 0x1ad   : > { %v340_v35 = vsel %vm339_vm7, %v1655_v34, %v338_v30  ;;  %v341_v36 = vsel %vm339_vm7, %v338_v30, %v1655_v34  ;;  %v477_v34 = vsel %vm252_vm0, %v316_v28, %v452_v32 }
 0x1ae   : > { %v350_v42 = vmul.f32 %v1708_v8, %v341_v36  ;;  %v351_v44 = vmul.f32 %v1727_v21, %v340_v35 }
 0x1b0   : > { %v400_v48 = vpop.permute.xlu1 %399  ;;  %v480_v50 = vsel %vm252_vm0, %v351_v44, %v459_v41  ;;  %v479_v51 = vsel %vm252_vm0, %v350_v42, %v458_v38 }
 0x1b1   : > { %v404_v56 = vsel %vm403_vm8, %v400_v48, %v402_v37  ;;  %v405_v60 = vsel %vm403_vm8, %v402_v37, %v400_v48  ;;  %v1084_v2 = vpack.c.bf16 %v480_v50, %v478_v49  ;;  %v1086_v3 = vpack.c.bf16 %v479_v51, %v477_v34 }
 0x1b2   : > { %v414_v7 = vmul.f32 %v1732_v24, %v404_v56  ;;  %v415_v9 = vmul.f32 %v1734_v25, %v405_v60  ;;  %v829_v56 = vld [vmem:[#allocation7 + $0x88] sm:$0xff]  ;;  %v812_v60 = vld [vmem:[#allocation7] sm:$0xff] }
 0x1b3   : > { %1085 = vmatprep.subr.bf16.mxu1 %v1084_v2 }
 0x1b4   : > { %1087 = vmatpush1.bf16.msra.mxu1 %v1086_v3  ;;  %v434_v12 = vpop.permute.xlu1 %433  ;;  %v484_v14 = vsel %vm252_vm0, %v415_v9, %v474_v6  ;;  %v483_v16 = vsel %vm252_vm0, %v414_v7, %v473_v5  ;;  %v813_v3 = vld [vmem:[#allocation7 + $0x8] sm:$0xff]  ;;  %v830_v5 = vld [vmem:[#allocation7 + $0x90] sm:$0xff]  ;;  %v831_v6 = vld [vmem:[#allocation7 + $0x98] sm:$0xff] }
 0x1b5   : > { %v439_v17 = vsel %vm437_vm9, %v436_v11, %v434_v12  ;;  %v1088_v18 = vpack.c.bf16 %v484_v14, %v482_v13  ;;  %v1090_v19 = vpack.c.bf16 %v483_v16, %v481_v15  ;;  %v438_v23 = vsel %vm437_vm9, %v434_v12, %v436_v11  ;;  %v814_v11 = vld [vmem:[#allocation7 + $0x10] sm:$0xff]  ;;  %v815_v12 = vld [vmem:[#allocation7 + $0x18] sm:$0xff]  ;;  %v832_v13 = vld [vmem:[#allocation7 + $0xa0] sm:$0xff] }
 0x1b6   : > { %v449_v20 = vmul.f32 %v1761_v10, %v439_v17  ;;  %v448_v54 = vmul.f32 %v1771_v22, %v438_v23  ;;  %v1110_v7 = vpack.c.bf16 %v813_v3, %v812_v60  ;;  %v1112_v9 = vpack.c.bf16 %v831_v6, %v830_v5  ;;  %v833_v14 = vld [vmem:[#allocation7 + $0xa8] sm:$0xff]  ;;  %v816_v17 = vld [vmem:[#allocation7 + $0x20] sm:$0xff] }
 0x1b7   : > { %1089 = vmatprep.subr.bf16.mxu1 %v1088_v18  ;;  %v1114_v15 = vpack.c.bf16 %v815_v12, %v814_v11  ;;  %v1116_v16 = vpack.c.bf16 %v833_v14, %v832_v13  ;;  %v817_v18 = vld [vmem:[#allocation7 + $0x28] sm:$0xff] }
 0x1b8   : > { %1091 = vmatpush1.bf16.msra.mxu1 %v1090_v19  ;;  %v834_v19 = vld [vmem:[#allocation7 + $0xb0] sm:$0xff]  ;;  %v1118_v23 = vpack.c.bf16 %v817_v18, %v816_v17 }
 0x1b9   : > { %1037 = vmatprep.subr.msk.mxu1 %vm252_vm0, %v449_v20  ;;  %v835_v20 = vld [vmem:[#allocation7 + $0xb8] sm:$0xff] }
 0x1bc   : > { %1038 = vmatpush1.msk.msra.mxu1 %vm252_vm0, %v448_v54  ;;  %v1120_v54 = vpack.c.bf16 %v835_v20, %v834_v19 }
 0x1bd   : > { %1039 = vmatmul.mubr.msk.f32.vlgmr.msra.gmra.mrb[0].mxu1 %vm485_vm10, %v1780_v26  ;;  %1040 = vmatprep.subr.msk.mxu1 %vm252_vm0, %v1624_v1 }
 0x1be   : > { %1041 = vmatpush1.msk.msra.mxu1 %vm252_vm0, %v1620_v0  ;;  %729 = vmatprep.mubr.f32.mxu1 %v1407_v31 }
 0x290   : > { %v561_v27 = vpop.f32.mrb[0].mxu1 }
 0x291   : > { %v563_v28 = vpop.f32.mrb[1].mxu1  ;;  %v569_v29 = vmul.f32 %v561_v27, %v561_v27 }
 0x292   : > { %v566_v30 = vadd.f32 %v563_v28, %v561_v27  ;;  %v570_v32 = vmul.f32 %v563_v28, %v563_v28 }
 0x294   : > { %567 = vadd.xlane.f32.xlu1 %v566_v30  ;;  %v571_v33 = vadd.f32 %v570_v32, %v569_v29  ;;  %v836_v29 = vld [vmem:[#allocation7 + $0xc0] sm:$0xff]  ;;  %v837_v30 = vld [vmem:[#allocation7 + $0xc8] sm:$0xff] }
 0x296   : > { %572 = vadd.xlane.f32.xlu0 %v571_v33  ;;  %v1124_v33 = vpack.c.bf16 %v837_v30, %v836_v29 }
 0x2a5   : > { %656 = vrot.lane.b32.xlu1 %v1780_v26, %s1408_s28 }
 0x321   : > { %v568_v35 = vpop.xlane.xlu1 %567 }
 0x322   : > { %v574_v36 = vmul.f32 0.00390625, %v568_v35  ;;  %v820_v35 = vld [vmem:[#allocation7 + $0x40] sm:$0xff] }
 0x323   : > { %v573_v37 = vpop.xlane.xlu0 %572 }
 0x324   : > { %v575_v1 = vmul.f32 0.00390625, %v573_v37  ;;  %v576_v38 = vmul.f32 %v574_v36, %v574_v36  ;;  %v578_v44 = vsub.f32 %v561_v27, %v574_v36  ;;  %v579_v45 = vsub.f32 %v563_v28, %v574_v36  ;;  %v818_v27 = vld [vmem:[#allocation7 + $0x30] sm:$0xff]  ;;  %v819_v28 = vld [vmem:[#allocation7 + $0x38] sm:$0xff]  ;;  %v821_v36 = vld [vmem:[#allocation7 + $0x48] sm:$0xff] }
 0x325   : > { %v657_v42 = vpop.permute.xlu1 %656  ;;  %v1122_v32 = vpack.c.bf16 %v819_v28, %v818_v27  ;;  %v838_v37 = vld [vmem:[#allocation7 + $0xd0] sm:$0xff] }
 0x326   : > { %v577_v41 = vsub.f32 %v575_v1, %v576_v38  ;;  %1042 = vmatmul.mubr.msk.f32.vlgmr.msra.gmra.mrb[2].mxu1 %vm658_vm11, %v657_v42  ;;  %v839_v1 = vld [vmem:[#allocation7 + $0xd8] sm:$0xff]  ;;  %v1126_v38 = vpack.c.bf16 %v821_v36, %v820_v35 }
 0x327   : > { %805 = vmatprep.mubr.f32.mxu1 %v1407_v31  ;;  %v828_v31 = vld [vmem:[#allocation7 + $0x80] sm:$0xff]  ;;  %v823_v42 = vld [vmem:[#allocation7 + $0x58] sm:$0xff] }
 0x328   : > { %v580_v0 = vadd.f32 1e-05, %v577_v41  ;;  %v1108_v2 = vpack.c.bf16 %v829_v56, %v828_v31  ;;  %v1128_v41 = vpack.c.bf16 %v839_v1, %v838_v37  ;;  %v843_v31 = vld [vmem:[#allocation7 + $0xf8] sm:$0xff] }
 0x32a   : > { %1231 = vrsqrt.f32 %v580_v0  ;;  %1109 = vmatprep.subr.bf16.mxu0 %v1108_v2  ;;  %v822_v0 = vld [vmem:[#allocation7 + $0x50] sm:$0xff] }
 0x32b   : > { %1111 = vmatpush3.bf16.msra.mxu0 %v1110_v7 }
 0x32c   : > { %1113 = vmatprep.subr.bf16.mxu0 %v1112_v9 }
 0x32f   : > { %1115 = vmatpush3.bf16.msra.mxu0 %v1114_v15 }
 0x330   : > { %1117 = vmatprep.subr.bf16.mxu0 %v1116_v16 }
 0x333   : > { %1119 = vmatpush3.bf16.msra.mxu0 %v1118_v23 }
 0x334   : > { %v1232_v46 = vpop.eup %1231  ;;  %1121 = vmatprep.subr.bf16.mxu0 %v1120_v54 }
 0x335   : > { %v582_v47 = vmul.f32 %v1232_v46, %v578_v44  ;;  %v583_v48 = vmul.f32 %v1232_v46, %v579_v45  ;;  %v840_v44 = vld [vmem:[#allocation7 + $0xe0] sm:$0xff]  ;;  %v841_v45 = vld [vmem:[#allocation7 + $0xe8] sm:$0xff]  ;;  %v1130_v46 = vpack.c.bf16 %v823_v42, %v822_v0 }
 0x337   : > { %vm584_vm12 = vcmp.ge.f32.partialorder %v582_v47, 0.0  ;;  %vm585_vm13 = vcmp.ge.f32.partialorder %v583_v48, 0.0  ;;  %v586_v49 = vmul.f32 0.2, %v582_v47  ;;  %v587_v50 = vmul.f32 0.2, %v583_v48  ;;  %1123 = vmatpush3.bf16.msra.mxu0 %v1122_v32 }
 0x338   : > { %1125 = vmatprep.subr.bf16.mxu0 %v1124_v33 }
 0x339   : > { %v1791_v34 = vsel %vm584_vm12, %v582_v47, %v586_v49  ;;  %v1793_v51 = vsel %vm585_vm13, %v583_v48, %v587_v50  ;;  %v1132_v47 = vpack.c.bf16 %v841_v45, %v840_v44  ;;  %v824_v48 = vld [vmem:[#allocation7 + $0x60] sm:$0xff]  ;;  %v825_v49 = vld [vmem:[#allocation7 + $0x68] sm:$0xff]  ;;  %v842_v50 = vld [vmem:[#allocation7 + $0xf0] sm:$0xff] }
 0x33a   : > { %592 = vrot.lane.b32.xlu1 %v1793_v51, %s1401_s30  ;;  %590 = vrot.lane.b32.xlu0 %v1791_v34, %s1401_s30  ;;  %v1134_v56 = vpack.c.bf16 %v825_v49, %v824_v48  ;;  %v1136_v60 = vpack.c.bf16 %v843_v31, %v842_v50  ;;  %s1887_s30 = scalar_lea.hbm %s1935_s4, %s1045_s29 }
 0x33b   : > { %1127 = vmatpush3.bf16.msra.mxu0 %v1126_v38  ;;  %v622_v38 = vmul.f32 %v1791_v34, %v1658_v39 }
 0x33c   : > { %1129 = vmatprep.subr.bf16.mxu0 %v1128_v41 }
 0x33e   : > { %598 = vrot.lane.b32.xlu1 %v1791_v34, %s1400_s23  ;;  %600 = vrot.lane.b32.xlu0 %v1793_v51, %s1400_s23 }
 0x33f   : > { %1131 = vmatpush3.bf16.msra.mxu0 %v1130_v46 }
 0x340   : > { %1133 = vmatprep.subr.bf16.mxu0 %v1132_v47 }
 0x342   : > { %606 = vrot.lane.b32.xlu1 %v1791_v34, %s1403_s25  ;;  %608 = vrot.lane.b32.xlu0 %v1793_v51, %s1403_s25  ;;  %s1319_s25 = scalar_lea.vmem %s1889_s10, 128 }
 0x343   : > { %1135 = vmatpush3.bf16.msra.mxu0 %v1134_v56  ;;  %p1320_p11 = scmp.ne.s32.totalorder %s1889_s10, %s1319_s25 }
 0x344   : > { %1137 = vmatprep.subr.bf16.mxu0 %v1136_v60 }
 0x345   : > { %p1321_p1 = pnand %p1320_p11, %p1949_p0 }
 0x346   : > { %614 = vrot.lane.b32.xlu1 %v1791_v34, %s1399_s21  ;;  %616 = vrot.lane.b32.xlu0 %v1793_v51, %s1399_s21 }
 0x347   : > { %p1322_p3 = pneg %p1321_p1 }
 0x34a   : > { %626 = vrot.lane.b32.xlu1 %v1793_v51, %s1402_s6  ;;  %624 = vrot.lane.b32.xlu0 %v1791_v34, %s1402_s6  ;;  %s920_s6 = scalar_lea.sflag [#allocation4], %s1606_s5 }
 0x34e   : > { %634 = vrot.lane.b32.xlu1 %v1793_v51, %s1405_s12  ;;  %632 = vrot.lane.b32.xlu0 %v1791_v34, %s1405_s12 }
 0x352   : > { %642 = vrot.lane.b32.xlu1 %v1793_v51, %s1404_s7  ;;  %640 = vrot.lane.b32.xlu0 %v1791_v34, %s1404_s7  ;;  %s1325_s7 = scalar_lea.vmem %s1324_s8, 256 }
 0x353   : > { %p1327_p9 = scmp.lt.s32.totalorder %s1325_s7, %s1319_s25 }
 0x355   : > { %p1328_p12 = por %p1327_p9, %p1326_p5 }
 0x356   : > { %650 = vrot.lane.b32.xlu1 %v1793_v51, %s1406_s13  ;;  %648 = vrot.lane.b32.xlu0 %v1791_v34, %s1406_s13 }
 0x357   : > { %p1329_p2 = pnand %p1328_p12, %p1322_p3 }
 0x35a   : > { %736 = vrot.lane.b32.xlu0 %v1780_v26, %s1409_s27 }
 0x3ac   : > { %v591_v2 = vpop.permute.xlu0 %590  ;;  %v593_v3 = vpop.permute.xlu1 %592 }
 0x3ad   : > { %v594_v5 = vsel %vm305_vm6, %v591_v2, %v593_v3  ;;  %v595_v6 = vsel %vm305_vm6, %v593_v3, %v591_v2 }
 0x3ae   : > { %v596_v13 = vmul.f32 %v595_v6, %v1695_v63  ;;  %v597_v14 = vmul.f32 %v594_v5, %v1701_v4  ;;  %v1410_v5 = vmov 112  }
 0x3af   : > { %1226 = vset.pattern.permute.xlu1 %v1410_v5  ;;  %1227 = vset.pattern.permute.xlu0 %v1410_v5 }
 0x3b0   : > { %v601_v7 = vpop.permute.xlu0 %600  ;;  %v599_v9 = vpop.permute.xlu1 %598  ;;  %845 = vperm.xlu1 %1226, %v1780_v26  }
 0x3b1   : > { %v602_v11 = vsel %vm322_vm4, %v599_v9, %v601_v7  ;;  %v603_v12 = vsel %vm322_vm4, %v601_v7, %v599_v9 }
 0x3b2   : > { %v604_v15 = vmul.f32 %v603_v12, %v1685_v58  ;;  %v605_v16 = vmul.f32 %v602_v11, %v1687_v59 }
 0x3b4   : > { %v1094_v17 = vpack.c.bf16 %v604_v15, %v596_v13  ;;  %v609_v18 = vpop.permute.xlu0 %608  ;;  %v607_v19 = vpop.permute.xlu1 %606  ;;  %v1092_v20 = vpack.c.bf16 %v605_v16, %v597_v14 }
 0x3b5   : > { %v610_v23 = vsel %vm339_vm7, %v607_v19, %v609_v18  ;;  %v611_v54 = vsel %vm339_vm7, %v609_v18, %v607_v19 }
 0x3b6   : > { %1093 = vmatprep.subr.bf16.mxu1 %v1092_v20  ;;  %v612_v59 = vmul.f32 %v611_v54, %v1708_v8  ;;  %v613_v28 = vmul.f32 %v610_v23, %v1727_v21 }
 0x3b7   : > { %1095 = vmatpush1.bf16.msra.mxu1 %v1094_v17 }
 0x3b8   : > { %v617_v27 = vpop.permute.xlu0 %616  ;;  %v615_v63 = vpop.permute.xlu1 %614 }
 0x3b9   : > { %v618_v4 = vsel %vm356_vm5, %v615_v63, %v617_v27  ;;  %v619_v58 = vsel %vm356_vm5, %v617_v27, %v615_v63 }
 0x3ba   : > { %v620_v29 = vmul.f32 %v619_v58, %v1690_v61  ;;  %v621_v30 = vmul.f32 %v618_v4, %v1692_v62  ;;  %v623_v61 = vmul.f32 %v1793_v51, %v1660_v40 }
 0x3bc   : > { %v1098_v32 = vpack.c.bf16 %v620_v29, %v612_v59  ;;  %v625_v33 = vpop.permute.xlu0 %624  ;;  %v627_v35 = vpop.permute.xlu1 %626  ;;  %v1096_v36 = vpack.c.bf16 %v621_v30, %v613_v28 }
 0x3bd   : > { %v628_v37 = vsel %vm386_vm2, %v625_v33, %v627_v35  ;;  %v629_v1 = vsel %vm386_vm2, %v627_v35, %v625_v33 }
 0x3be   : > { %v630_v8 = vmul.f32 %v628_v37, %v1672_v52  ;;  %v631_v21 = vmul.f32 %v629_v1, %v1674_v53  ;;  %1097 = vmatprep.subr.bf16.mxu1 %v1096_v36 }
 0x3bf   : > { %1099 = vmatpush1.bf16.msra.mxu1 %v1098_v32 }
 0x3c0   : > { %v1102_v62 = vpack.c.bf16 %v630_v8, %v622_v38  ;;  %v633_v41 = vpop.permute.xlu0 %632  ;;  %v635_v0 = vpop.permute.xlu1 %634  ;;  %v1100_v42 = vpack.c.bf16 %v631_v21, %v623_v61 }
 0x3c1   : > { %v636_v44 = vsel %vm403_vm8, %v633_v41, %v635_v0  ;;  %v637_v39 = vsel %vm403_vm8, %v635_v0, %v633_v41 }
 0x3c2   : > { %1101 = vmatprep.subr.bf16.mxu1 %v1100_v42  ;;  %v638_v51 = vmul.f32 %v636_v44, %v1732_v24  ;;  %v639_v45 = vmul.f32 %v637_v39, %v1734_v25  ;;  %v827_v25 = vld [vmem:[#allocation7 + $0x78] sm:$0xff] }
 0x3c3   : > { %1103 = vmatpush1.bf16.msra.mxu1 %v1102_v62 }
 0x3c4   : > { %v641_v52 = vpop.permute.xlu0 %640  ;;  %v643_v34 = vpop.permute.xlu1 %642 }
 0x3c5   : > { %v644_v53 = vsel %vm420_vm3, %v641_v52, %v643_v34  ;;  %v645_v40 = vsel %vm420_vm3, %v643_v34, %v641_v52 }
 0x3c6   : > { %v646_v46 = vmul.f32 %v644_v53, %v1679_v55  ;;  %v647_v47 = vmul.f32 %v645_v40, %v1683_v57  ;;  %v826_v57 = vld [vmem:[#allocation7 + $0x70] sm:$0xff] }
 0x3c7   : > { %v1138_v3 = vpack.c.bf16 %v827_v25, %v826_v57 }
 0x3c8   : > { %v1106_v48 = vpack.c.bf16 %v646_v46, %v638_v51  ;;  %v649_v49 = vpop.permute.xlu0 %648  ;;  %v651_v50 = vpop.permute.xlu1 %650  ;;  %v1104_v31 = vpack.c.bf16 %v647_v47, %v639_v45 }
 0x3c9   : > { %v653_v56 = vsel %vm437_vm9, %v651_v50, %v649_v49  ;;  %v652_v60 = vsel %vm437_vm9, %v649_v49, %v651_v50  ;;  %1139 = vmatpush3.bf16.msra.mxu0 %v1138_v3 }
 0x3ca   : > { %v655_v2 = vmul.f32 %v1761_v10, %v653_v56  ;;  %1105 = vmatprep.subr.bf16.mxu1 %v1104_v31  ;;  %v654_v24 = vmul.f32 %v1771_v22, %v652_v60 }
 0x3cb   : > { %1107 = vmatpush1.bf16.msra.mxu1 %v1106_v48 }
 0x3cc   : > { %757 = vmatprep.subr.mxu1 %v655_v2  ;;  %v737_v55 = vpop.permute.xlu0 %736 }
 0x3cf   : > { %758 = vmatpush1.msra.mxu1 %v654_v24 }
 0x3d0   : > { %1043 = vmatmul.mubr.msk.f32.vlgmr.msra.gmra.mrb[2].mxu1 %vm738_vm14, %v737_v55 }
 0x42f   : > { %v846_v7 = vpop.permute.xlu1 %845 }
 0x4a3   : > { %v807_v43 = vpop.f32.mrb[2].mxu1 }
 0x4a4   : > { %v809_v10 = vpop.f32.mrb[3].mxu1 }
 0x4a5   : > { %912 = vmatprep.mubr.f32.mxu0 %v809_v10 }
 0x4a6   : > { %913 = vmatmul.mubr.f32.vlgmr.msra.gmra.mrb[0].mxu0 %v807_v43 }
 0x579   : > { %v1081_v22 = vpop.f32.mrb[0].mxu0 }
 0x57a   : > { %v1082_v6 = vpop.f32.mrb[1].mxu0 }
 0x57b   : > { %v1083_v9 = vadd.f32 %v1082_v6, %v1081_v22 }
 0x57d   : > { %v915_v11 = vadd.f32 %v1083_v9, %v846_v7 }
 0x57f   : > { %918 = vst [vmem:[%s242_s9] sm:$0xff] %v915_v11 }
 0x580   : > { %1332 = shalt.err (!%p1329_p2)
}
 0x581   : > { %s1333_s5 = scalar_lea.hbm %s1887_s30, 128  ;;  %s1337_s24 = scalar_lea.hbm %s1935_s4, 256 }
 0x582   : > { %p1334_p13 = scmp.ne.s32.totalorder %s1887_s30, %s1333_s5  ;;  %p1338_p4 = scmp.lt.u32.totalorder %s1887_s30, %s1935_s4 }
 0x583   : > { %p1339_p7 = scmp.lt.u32.totalorder %s1337_s24, %s1333_s5  ;;  %p1341_p11 = scmp.lt.u32.totalorder %s1333_s5, %s1887_s30 }
 0x584   : > { %p1335_p6 = pnand %p1334_p13, %p1949_p0 }
 0x585   : > { %p1340_p8 = por %p1339_p7, %p1338_p4 }
 0x586   : > { %p1336_p10 = pneg %p1335_p6 }
 0x587   : > { %p1342_p1 = por %p1341_p11, %p1340_p8 }
 0x589   : > { %p1343_p3 = pnand %p1342_p1, %p1336_p10 }
 0x58b   : > { %1346 = shalt.err (!%p1343_p3)
}
 0x58c   : > { %1152 = dma.vmem_to_hbm [thread:$0]  (%p1949_p0), %s1889_s10, 128, %s1887_s30, %s920_s6  }
 0x58d PF: > { %s945_s27 = sand.u32 1, %s1377_s15   ;;  %p1950_p5 = scmp.ne.s32.totalorder %s1940_s22, 0 }
 0x58e   : > { %p1951_p9 = scmp.ge.s32.totalorder %s1389_s18, 2  ;;  %s946_s29 = scalar_lea.sflag [#allocation4], %s945_s27 }
 0x590   : > { %p1166_p12 = pnand %p1951_p9, %p1950_p5 }
 0x592   : > { %1372 = dma.done.wait (!%p1166_p12), %s946_s29, 128  }
 0x593   : > { %1374 = vsyncadd (!%p1166_p12), %s946_s29, 4294967168  ;;  %p18_p2 = scmp.ge.s32.totalorder %s1547_s11, 4   ;;  %s1952_s15 = smov %s1381_s16 }
 0x594   : > { %s1953_s16 = smov %s1385_s17  ;;  %s1954_s17 = smov %s1556_s14 }
 0x595   : > { %s1955_s18 = smov %s1547_s11  ;;  %20 = sbr.rel (!%p18_p2) target bundleno = 6 (0x6), region = 89 }
 0x59c   :  { %951 = vsyncpa [#allocation3], 1 }
 0x59d   :  { %953 = vsyncpa [#allocation3 + $0x1], 1 }
 0x59e   :  { %954 = vsyncpa [#allocation6], 1 }
 0x59f   :  { %955 = vsyncpa [#allocation4], 1 }
 0x5a0   :  { %957 = vsyncpa [#allocation4 + $0x1], 1 }

</bundles_post_ra>
